<compile_context>
chip_gen: v7x
topology: tpu7x:2x2x1
jax: 0.10.0
libtpu: 0.0.40
codegen_flags: <defaults>
</compile_context>

<pallas_src>
import math
import jax
import jax.numpy as jnp
from jax.experimental import pallas as pl
from jax.experimental.pallas import tpu as pltpu


def _gelu_exact(v):
    # exact GELU: 0.5 * v * (1 + erf(v / sqrt(2)))  -- matches nn.GELU default
    return 0.5 * v * (1.0 + jax.lax.erf(v * (1.0 / math.sqrt(2.0))))


def mlp_kernel(x_ref,
               w0_ref, b0_ref,
               w1_ref, b1_ref,
               w2_ref, b2_ref,
               w3_ref, b3_ref,
               o_ref):
    def linear(a, w_ref, b_ref):
        w = w_ref[...]
        # cast activations to the weight dtype (f32 or bf16) so the MXU runs at
        # the matching rate; accumulate in f32, bias/GELU in f32.
        return jnp.dot(a.astype(w.dtype), w,
                       preferred_element_type=jnp.float32) + b_ref[...]

    h = _gelu_exact(linear(x_ref[...], w0_ref, b0_ref))   # input_layer
    h = _gelu_exact(linear(h, w1_ref, b1_ref))            # to_property[0..2]
    h = _gelu_exact(linear(h, w2_ref, b2_ref))            # to_property[3..5]
    o_ref[...] = linear(h, w3_ref, b3_ref).astype(o_ref.dtype)  # to_property[6]


def _const_spec(shape):
    """Constant-index weight/bias block; single-buffered if supported."""
    try:
        return pl.BlockSpec(shape, lambda i: (0, 0),
                            pipeline_mode=pl.Buffered(1))
    except Exception:
        # Older jax without BlockSpec.pipeline_mode / pl.Buffered: fall back
        # to the default (double-buffered) block. Only costs VMEM, not BW,
        # since the constant index_map means the block is never re-fetched.
        return pl.BlockSpec(shape, lambda i: (0, 0))


def _forward_padded(xp, p, batch_tile, out_dtype):
    """xp: [Bp, in_dim] with Bp % batch_tile == 0."""
    Bp, in_dim = xp.shape
    hid = p["w0"].shape[1]
    out_dim = p["w3"].shape[1]
    grid = (Bp // batch_tile,)

    in_specs = [
        pl.BlockSpec((batch_tile, in_dim), lambda i: (i, 0)),    # x tile over batch
        _const_spec((in_dim, hid)),   _const_spec((1, hid)),     # layer 0
        _const_spec((hid, hid)),      _const_spec((1, hid)),     # layer 1
        _const_spec((hid, hid)),      _const_spec((1, hid)),     # layer 2
        _const_spec((hid, out_dim)),  _const_spec((1, out_dim)), # layer 3
    ]
    # NOTE: out_dim < 128 lanes -> masked stores; the output slab is tiny
    # relative to the matmuls here, so lane-padding it is not worth the 16x
    # extra HBM writeback.  Revisit if out_dim or B scale up substantially.
    out_spec = pl.BlockSpec((batch_tile, out_dim), lambda i: (i, 0))

    # --- VMEM budget (with headroom), capped at 64 MiB so it fits v7x too ---
    weight_bytes = sum(int(p[k].size) * p[k].dtype.itemsize for k in p)
    x_tile_bytes = batch_tile * in_dim * xp.dtype.itemsize
    h_bytes = batch_tile * hid * 4
    o_tile_bytes = batch_tile * out_dim * 4
    vmem_est = 2 * weight_bytes + 2 * (x_tile_bytes + o_tile_bytes) + 4 * h_bytes
    vmem_limit = int(min(64 << 20, max(32 << 20, 2 * vmem_est)))

    flops = 2 * Bp * (in_dim * hid + 2 * hid * hid + hid * out_dim)
    transcendentals = 3 * Bp * hid
    bytes_accessed = int(xp.size * xp.dtype.itemsize + weight_bytes
                         + Bp * out_dim * jnp.dtype(out_dtype).itemsize)

    return pl.pallas_call(
        mlp_kernel,
        out_shape=jax.ShapeDtypeStruct((Bp, out_dim), out_dtype),
        grid_spec=pltpu.PrefetchScalarGridSpec(
            num_scalar_prefetch=0,
            grid=grid,
            in_specs=in_specs,
            out_specs=out_spec,
        ),
        compiler_params=pltpu.CompilerParams(
            dimension_semantics=("parallel",),
            vmem_limit_bytes=vmem_limit),
        cost_estimate=pl.CostEstimate(
            flops=flops,
            transcendentals=transcendentals,
            bytes_accessed=bytes_accessed),
    )(xp,
      p["w0"], p["b0"],
      p["w1"], p["b1"],
      p["w2"], p["b2"],
      p["w3"], p["b3"])


def property_regressor(x, params, *, batch_tile=None, use_bf16=False):
    """x: [B, in_dim]. params: dict of transposed weights ([in,out]) / biases ([1,out])."""
    B, in_dim = x.shape
    out_dtype = x.dtype

    p = dict(params)
    if use_bf16:
        # bf16 matmul inputs for v6e/v7x (half the weight DMA, bf16 MXU rate);
        # biases stay f32, accumulation/GELU stay f32 inside the kernel.
        x = x.astype(jnp.bfloat16)
        for k in ("w0", "w1", "w2", "w3"):
            p[k] = p[k].astype(jnp.bfloat16)

    if batch_tile is None:
        b8 = 8 * pl.cdiv(B, 8)
        # small B: whole (padded) batch in one grid step; large B: 256-row
        # MXU-aligned tiles -> >=2 parallel steps for v7x's two TensorCores.
        batch_tile = b8 if b8 <= 512 else 256

    num_tiles = pl.cdiv(B, batch_tile)
    Bp = num_tiles * batch_tile
    if Bp != B:
        x = jnp.pad(x, ((0, Bp - B), (0, 0)))   # zero rows, sliced off below

    out = _forward_padded(x, p, batch_tile, out_dtype)
    return out[:B] if Bp != B else out


def init_params(key, in_dim, hid_dim, out_dim):
    """Deterministic init mimicking nn.Linear default (uniform +-1/sqrt(fan_in)).
    Weights stored transposed: [in_features, out_features]."""
    ks = jax.random.split(key, 8)

    def linear(kw, kb, fan_in, fan_out):
        bound = 1.0 / math.sqrt(fan_in)
        w = jax.random.uniform(kw, (fan_in, fan_out), jnp.float32, -bound, bound)
        b = jax.random.uniform(kb, (1, fan_out), jnp.float32, -bound, bound)
        return w, b

    w0, b0 = linear(ks[0], ks[1], in_dim, hid_dim)
    w1, b1 = linear(ks[2], ks[3], hid_dim, hid_dim)
    w2, b2 = linear(ks[4], ks[5], hid_dim, hid_dim)
    w3, b3 = linear(ks[6], ks[7], hid_dim, out_dim)
    return dict(w0=w0, b0=b0, w1=w1, b1=b1, w2=w2, b2=b2, w3=w3, b3=b3)


def reference(x, p):
    def gelu(v):
        return 0.5 * v * (1.0 + jax.lax.erf(v / jnp.sqrt(2.0)))
    h = gelu(x @ p["w0"] + p["b0"])
    h = gelu(h @ p["w1"] + p["b1"])
    h = gelu(h @ p["w2"] + p["b2"])
    return h @ p["w3"] + p["b3"]


if __name__ == "__main__":
    key = jax.random.PRNGKey(0)
    k_x, k_p, k_x2 = jax.random.split(key, 3)

    B, in_dim, hid_dim, out_dim = 16, 32, 64, 8
    x = jax.random.normal(k_x, (B, in_dim), jnp.float32)
    params = init_params(k_p, in_dim, hid_dim, out_dim)

    out = property_regressor(x, params)           # single grid step at this size
    out = jax.block_until_ready(out)
    ref = reference(x, params)
    assert out.shape == (B, out_dim)
    assert jnp.allclose(out, ref, atol=1e-4, rtol=1e-4), "mismatch vs JAX reference"

    # ragged batch exercises the pl.cdiv grid + zero-pad path
    B2 = 19
    x2 = jax.random.normal(k_x2, (B2, in_dim), jnp.float32)
    out2 = jax.block_until_ready(property_regressor(x2, params))
    ref2 = reference(x2, params)
    assert out2.shape == (B2, out_dim)
    assert jnp.allclose(out2, ref2, atol=1e-4, rtol=1e-4), "mismatch vs JAX reference (ragged B)"

    # larger batch exercises the multi-tile ("parallel" grid) path
    B3 = 600
    x3 = jax.random.normal(k_x, (B3, in_dim), jnp.float32)
    out3 = jax.block_until_ready(property_regressor(x3, params))
    ref3 = reference(x3, params)
    assert out3.shape == (B3, out_dim)
    assert jnp.allclose(out3, ref3, atol=1e-4, rtol=1e-4), "mismatch vs JAX reference (tiled B)"

    print("KERNEL_OK")
</pallas_src>

<mosaic_0001>
module attributes {stable_mosaic.version = 11 : i64} {
  func.func @mlp_kernel(%arg0: i32, %arg1: memref<16x32xf32, #tpu.memory_space<vmem>>, %arg2: memref<32x64xf32, #tpu.memory_space<vmem>>, %arg3: memref<1x64xf32, #tpu.memory_space<vmem>>, %arg4: memref<64x64xf32, #tpu.memory_space<vmem>>, %arg5: memref<1x64xf32, #tpu.memory_space<vmem>>, %arg6: memref<64x64xf32, #tpu.memory_space<vmem>>, %arg7: memref<1x64xf32, #tpu.memory_space<vmem>>, %arg8: memref<64x8xf32, #tpu.memory_space<vmem>>, %arg9: memref<1x8xf32, #tpu.memory_space<vmem>>, %arg10: memref<16x8xf32, #tpu.memory_space<vmem>>) attributes {dimension_semantics = [#tpu.dimension_semantics<parallel>], iteration_bounds = array<i64: 1>, scalar_prefetch = 0 : i64, scratch_operands = 0 : i64, tpu.core_type = #tpu.core_type<tc>, window_params = [{transform_indices = @transform_0, window_bounds = array<i64: 16, 32>}, {pipeline_mode = #tpu.pipeline_mode<synchronous>, transform_indices = @transform_1, window_bounds = array<i64: 32, 64>}, {pipeline_mode = #tpu.pipeline_mode<synchronous>, transform_indices = @transform_2, window_bounds = array<i64: 1, 64>}, {pipeline_mode = #tpu.pipeline_mode<synchronous>, transform_indices = @transform_3, window_bounds = array<i64: 64, 64>}, {pipeline_mode = #tpu.pipeline_mode<synchronous>, transform_indices = @transform_4, window_bounds = array<i64: 1, 64>}, {pipeline_mode = #tpu.pipeline_mode<synchronous>, transform_indices = @transform_5, window_bounds = array<i64: 64, 64>}, {pipeline_mode = #tpu.pipeline_mode<synchronous>, transform_indices = @transform_6, window_bounds = array<i64: 1, 64>}, {pipeline_mode = #tpu.pipeline_mode<synchronous>, transform_indices = @transform_7, window_bounds = array<i64: 64, 8>}, {pipeline_mode = #tpu.pipeline_mode<synchronous>, transform_indices = @transform_8, window_bounds = array<i64: 1, 8>}, {transform_indices = @transform_9, window_bounds = array<i64: 16, 8>}]} {
    %c0 = arith.constant 0 : index
    %c0_0 = arith.constant 0 : index
    %0 = vector.load %arg1[%c0, %c0_0] : memref<16x32xf32, #tpu.memory_space<vmem>>, vector<16x32xf32>
    %c0_1 = arith.constant 0 : index
    %c0_2 = arith.constant 0 : index
    %1 = vector.load %arg2[%c0_1, %c0_2] : memref<32x64xf32, #tpu.memory_space<vmem>>, vector<32x64xf32>
    %cst = arith.constant dense<0.000000e+00> : vector<16x64xf32>
    %2 = tpu.matmul %0, %1, %cst {dimension_numbers = #tpu.dot_dimension_numbers<[1], [0], [0], [1], [0, 0, 1, 1], [], []>} : vector<16x32xf32>, vector<32x64xf32>, vector<16x64xf32> -> vector<16x64xf32>
    %c0_3 = arith.constant 0 : index
    %c0_4 = arith.constant 0 : index
    %3 = vector.load %arg3[%c0_3, %c0_4] : memref<1x64xf32, #tpu.memory_space<vmem>>, vector<1x64xf32>
    %4 = vector.broadcast %3 : vector<1x64xf32> to vector<16x64xf32>
    %5 = arith.addf %2, %4 : vector<16x64xf32>
    %cst_5 = arith.constant 5.000000e-01 : f32
    %6 = vector.broadcast %cst_5 : f32 to vector<16x64xf32>
    %7 = arith.mulf %6, %5 : vector<16x64xf32>
    %cst_6 = arith.constant 0.707106769 : f32
    %8 = vector.broadcast %cst_6 : f32 to vector<16x64xf32>
    %9 = arith.mulf %5, %8 : vector<16x64xf32>
    %10 = math.erf %9 : vector<16x64xf32>
    %cst_7 = arith.constant 1.000000e+00 : f32
    %11 = vector.broadcast %cst_7 : f32 to vector<16x64xf32>
    %12 = arith.addf %11, %10 : vector<16x64xf32>
    %13 = arith.mulf %7, %12 : vector<16x64xf32>
    %c0_8 = arith.constant 0 : index
    %c0_9 = arith.constant 0 : index
    %14 = vector.load %arg4[%c0_8, %c0_9] : memref<64x64xf32, #tpu.memory_space<vmem>>, vector<64x64xf32>
    %cst_10 = arith.constant dense<0.000000e+00> : vector<16x64xf32>
    %15 = tpu.matmul %13, %14, %cst_10 {dimension_numbers = #tpu.dot_dimension_numbers<[1], [0], [0], [1], [0, 0, 1, 1], [], []>} : vector<16x64xf32>, vector<64x64xf32>, vector<16x64xf32> -> vector<16x64xf32>
    %c0_11 = arith.constant 0 : index
    %c0_12 = arith.constant 0 : index
    %16 = vector.load %arg5[%c0_11, %c0_12] : memref<1x64xf32, #tpu.memory_space<vmem>>, vector<1x64xf32>
    %17 = vector.broadcast %16 : vector<1x64xf32> to vector<16x64xf32>
    %18 = arith.addf %15, %17 : vector<16x64xf32>
    %cst_13 = arith.constant 5.000000e-01 : f32
    %19 = vector.broadcast %cst_13 : f32 to vector<16x64xf32>
    %20 = arith.mulf %19, %18 : vector<16x64xf32>
    %cst_14 = arith.constant 0.707106769 : f32
    %21 = vector.broadcast %cst_14 : f32 to vector<16x64xf32>
    %22 = arith.mulf %18, %21 : vector<16x64xf32>
    %23 = math.erf %22 : vector<16x64xf32>
    %cst_15 = arith.constant 1.000000e+00 : f32
    %24 = vector.broadcast %cst_15 : f32 to vector<16x64xf32>
    %25 = arith.addf %24, %23 : vector<16x64xf32>
    %26 = arith.mulf %20, %25 : vector<16x64xf32>
    %c0_16 = arith.constant 0 : index
    %c0_17 = arith.constant 0 : index
    %27 = vector.load %arg6[%c0_16, %c0_17] : memref<64x64xf32, #tpu.memory_space<vmem>>, vector<64x64xf32>
    %cst_18 = arith.constant dense<0.000000e+00> : vector<16x64xf32>
    %28 = tpu.matmul %26, %27, %cst_18 {dimension_numbers = #tpu.dot_dimension_numbers<[1], [0], [0], [1], [0, 0, 1, 1], [], []>} : vector<16x64xf32>, vector<64x64xf32>, vector<16x64xf32> -> vector<16x64xf32>
    %c0_19 = arith.constant 0 : index
    %c0_20 = arith.constant 0 : index
    %29 = vector.load %arg7[%c0_19, %c0_20] : memref<1x64xf32, #tpu.memory_space<vmem>>, vector<1x64xf32>
    %30 = vector.broadcast %29 : vector<1x64xf32> to vector<16x64xf32>
    %31 = arith.addf %28, %30 : vector<16x64xf32>
    %cst_21 = arith.constant 5.000000e-01 : f32
    %32 = vector.broadcast %cst_21 : f32 to vector<16x64xf32>
    %33 = arith.mulf %32, %31 : vector<16x64xf32>
    %cst_22 = arith.constant 0.707106769 : f32
    %34 = vector.broadcast %cst_22 : f32 to vector<16x64xf32>
    %35 = arith.mulf %31, %34 : vector<16x64xf32>
    %36 = math.erf %35 : vector<16x64xf32>
    %cst_23 = arith.constant 1.000000e+00 : f32
    %37 = vector.broadcast %cst_23 : f32 to vector<16x64xf32>
    %38 = arith.addf %37, %36 : vector<16x64xf32>
    %39 = arith.mulf %33, %38 : vector<16x64xf32>
    %c0_24 = arith.constant 0 : index
    %c0_25 = arith.constant 0 : index
    %40 = vector.load %arg8[%c0_24, %c0_25] : memref<64x8xf32, #tpu.memory_space<vmem>>, vector<64x8xf32>
    %cst_26 = arith.constant dense<0.000000e+00> : vector<16x8xf32>
    %41 = tpu.matmul %39, %40, %cst_26 {dimension_numbers = #tpu.dot_dimension_numbers<[1], [0], [0], [1], [0, 0, 1, 1], [], []>} : vector<16x64xf32>, vector<64x8xf32>, vector<16x8xf32> -> vector<16x8xf32>
    %c0_27 = arith.constant 0 : index
    %c0_28 = arith.constant 0 : index
    %42 = vector.load %arg9[%c0_27, %c0_28] : memref<1x8xf32, #tpu.memory_space<vmem>>, vector<1x8xf32>
    %43 = vector.broadcast %42 : vector<1x8xf32> to vector<16x8xf32>
    %44 = arith.addf %41, %43 : vector<16x8xf32>
    %c0_29 = arith.constant 0 : index
    %c0_30 = arith.constant 0 : index
    %45 = vector.load %arg10[%c0_29, %c0_30] : memref<16x8xf32, #tpu.memory_space<vmem>>, vector<16x8xf32>
    tpu.vector_store %arg10[%c0_29, %c0_30], %44 {strides = array<i32>} : memref<16x8xf32, #tpu.memory_space<vmem>>, vector<16x8xf32>,
    return
  }
  func.func @transform_0(%arg0: i32) -> (i32, i32) {
    %c0_i32 = arith.constant 0 : i32
    %c0_i32_0 = arith.constant 0 : i32
    return %arg0, %c0_i32 : i32, i32
  }
  func.func @transform_1(%arg0: i32) -> (i32, i32) {
    %c0_i32 = arith.constant 0 : i32
    %c0_i32_0 = arith.constant 0 : i32
    %c0_i32_1 = arith.constant 0 : i32
    return %c0_i32, %c0_i32_0 : i32, i32
  }
  func.func @transform_2(%arg0: i32) -> (i32, i32) {
    %c0_i32 = arith.constant 0 : i32
    %c0_i32_0 = arith.constant 0 : i32
    %c0_i32_1 = arith.constant 0 : i32
    return %c0_i32, %c0_i32_0 : i32, i32
  }
  func.func @transform_3(%arg0: i32) -> (i32, i32) {
    %c0_i32 = arith.constant 0 : i32
    %c0_i32_0 = arith.constant 0 : i32
    %c0_i32_1 = arith.constant 0 : i32
    return %c0_i32, %c0_i32_0 : i32, i32
  }
  func.func @transform_4(%arg0: i32) -> (i32, i32) {
    %c0_i32 = arith.constant 0 : i32
    %c0_i32_0 = arith.constant 0 : i32
    %c0_i32_1 = arith.constant 0 : i32
    return %c0_i32, %c0_i32_0 : i32, i32
  }
  func.func @transform_5(%arg0: i32) -> (i32, i32) {
    %c0_i32 = arith.constant 0 : i32
    %c0_i32_0 = arith.constant 0 : i32
    %c0_i32_1 = arith.constant 0 : i32
    return %c0_i32, %c0_i32_0 : i32, i32
  }
  func.func @transform_6(%arg0: i32) -> (i32, i32) {
    %c0_i32 = arith.constant 0 : i32
    %c0_i32_0 = arith.constant 0 : i32
    %c0_i32_1 = arith.constant 0 : i32
    return %c0_i32, %c0_i32_0 : i32, i32
  }
  func.func @transform_7(%arg0: i32) -> (i32, i32) {
    %c0_i32 = arith.constant 0 : i32
    %c0_i32_0 = arith.constant 0 : i32
    %c0_i32_1 = arith.constant 0 : i32
    return %c0_i32, %c0_i32_0 : i32, i32
  }
  func.func @transform_8(%arg0: i32) -> (i32, i32) {
    %c0_i32 = arith.constant 0 : i32
    %c0_i32_0 = arith.constant 0 : i32
    %c0_i32_1 = arith.constant 0 : i32
    return %c0_i32, %c0_i32_0 : i32, i32
  }
  func.func @transform_9(%arg0: i32) -> (i32, i32) {
    %c0_i32 = arith.constant 0 : i32
    %c0_i32_0 = arith.constant 0 : i32
    return %arg0, %c0_i32 : i32, i32
  }
}

</mosaic_0001>

<bundles_post_ra>
// kernel: tpu_custom_call.1
= control target key start
LH: loop header
LB: loop body
LE: loop exit
PB: predicated region body
PF: predicated region fallthrough
CT: control target
= control target key end

     0   :  { %14 = vsyncpa [#allocation3], 0  ;;  %s875_s0 = inlined_call_operand.vmem [shape: f32[16,32], index: 0, kind: input, shape index: {}]   ;;  %s876_s1 = inlined_call_operand.hbm [shape: f32[32,64], index: 1, kind: input, shape index: {}]   ;;  %s877_s2 = inlined_call_operand.vmem [shape: f32[1,64], index: 2, kind: input, shape index: {}]   ;;  %s878_s3 = inlined_call_operand.vmem [shape: f32[64,64], index: 3, kind: input, shape index: {}]   ;;  %s879_s4 = inlined_call_operand.vmem [shape: f32[1,64], index: 4, kind: input, shape index: {}]   ;;  %s880_s5 = inlined_call_operand.hbm [shape: f32[64,64], index: 5, kind: input, shape index: {}]   ;;  %s881_s6 = inlined_call_operand.vmem [shape: f32[1,64], index: 6, kind: input, shape index: {}]   ;;  %s882_s7 = inlined_call_operand.vmem [shape: f32[64,8], index: 7, kind: input, shape index: {}]   ;;  %s883_s8 = inlined_call_operand.vmem [shape: f32[1,8], index: 8, kind: input, shape index: {}]   ;;  %s884_s9 = inlined_call_operand.vmem [shape: f32[16,8], index: 9, kind: output, shape index: {}]  }
   0x1   :  { %15 = vsyncpa [#allocation5], 0  ;;  %s719_s30 = smov [#allocation2]   ;;  %s671_s13 = scalar_lea.hbm %s876_s1, 512 }
   0x2   :  { %s23_s10 = sshll.u32 %s719_s30, 4  ;;  %p672_p0 = scmp.ne.s32.totalorder %s876_s1, %s671_s13  ;;  %s24_s10 = int_to_ptr.vmem [resolvable:$true] %s23_s10 }
   0x3   :  { %p675_p1 = scmp.lt.u32.totalorder %s671_s13, %s876_s1 }
   0x5   :  { %p677_p2 = pnand %p675_p1, %p672_p0 }
   0x7   :  { %680 = shalt.err (!%p677_p2)
}
   0x8   :  { %s681_s18 = scalar_lea.vmem %s24_s10, 512  ;;  %p686_p4 = scmp.lt.s32.totalorder %s24_s10, %s24_s10 }
   0x9   :  { %p682_p3 = scmp.ne.s32.totalorder %s24_s10, %s681_s18  ;;  %p687_p5 = scmp.lt.s32.totalorder %s681_s18, %s681_s18 }
   0xb   :  { %p688_p6 = por %p687_p5, %p686_p4 }
   0xd   :  { %p689_p7 = pnand %p688_p6, %p682_p3 }
   0xf   :  { %692 = shalt.err (!%p689_p7)
}
  0x10   :  { %s720_s19 = smov 128   ;;  %s721_s20 = smov 8  }
  0x11   :  { %29 = dma.hbm_to_vmem [thread:$0]  %s876_s1, 512, %s24_s10, [#allocation3], %s720_s19, %s720_s19, %s721_s20  }
  0x12   :  { %s722_s23 = smov [#allocation4]   ;;  %s693_s27 = scalar_lea.hbm %s880_s5, 1024 }
  0x13   :  { %s41_s24 = sshll.u32 %s722_s23, 4  ;;  %p694_p8 = scmp.ne.s32.totalorder %s880_s5, %s693_s27  ;;  %s42_s24 = int_to_ptr.vmem [resolvable:$true] %s41_s24 }
  0x14   :  { %p697_p9 = scmp.lt.u32.totalorder %s693_s27, %s880_s5 }
  0x16   :  { %p699_p10 = pnand %p697_p9, %p694_p8 }
  0x18   :  { %702 = shalt.err (!%p699_p10)
}
  0x19   :  { %s703_s12 = scalar_lea.vmem %s42_s24, 1024  ;;  %p708_p12 = scmp.lt.s32.totalorder %s42_s24, %s42_s24 }
  0x1a   :  { %p704_p11 = scmp.ne.s32.totalorder %s42_s24, %s703_s12  ;;  %p709_p13 = scmp.lt.s32.totalorder %s703_s12, %s703_s12 }
  0x1c   :  { %p710_p0 = por %p709_p13, %p708_p12 }
  0x1e   :  { %p711_p1 = pnand %p710_p0, %p704_p11 }
  0x20   :  { %714 = shalt.err (!%p711_p1)
}
  0x21   :  { %47 = dma.hbm_to_vmem [thread:$0]  %s880_s5, 1024, %s42_s24, [#allocation5], %s720_s19, %s720_s19, %s721_s20  }
  0x22   :  { %715 = dma.done.wait [#allocation3], 512  }
  0x23   :  { %716 = vsyncadd [#allocation3], 4294966784 }
  0x24   :  { %717 = dma.done.wait [#allocation5], 1024  }
  0x25   :  { %718 = vsyncadd [#allocation5], 4294966272  ;;  %vm73_vm0 = vcmask 261120   ;;  %v62_v0 = vld [vmem:[#allocation2] sm:$0xff]  ;;  %v63_v1 = vld [vmem:[#allocation2 + $0x8] sm:$0xff]  ;;  %vm180_vm1 = vcmask 523264  }
  0x26   :  { %v64_v2 = vld [vmem:[#allocation2 + $0x10] sm:$0xff]  ;;  %v599_v3 = vpack.c.bf16 %v63_v1, %v62_v0  ;;  %v65_v4 = vld [vmem:[#allocation2 + $0x18] sm:$0xff]  ;;  %v60_v5 = vld [vmem:[%s875_s0] sm:$0xff]  ;;  %vm474_vm2 = vcmask 64512  }
  0x27   :  { %v603_v6 = vpack.c.bf16 %v65_v4, %v64_v2  ;;  %539 = vmatprep.mubr.msk.f32.mxu0 %vm73_vm0, %v60_v5  ;;  %v61_v7 = vld [vmem:[%s875_s0 + $0x8] sm:$0xff]  ;;  %v165_v8 = vld [vmem:[%s878_s3] sm:$0xff]  ;;  %v167_v11 = vld [vmem:[%s878_s3 + $0x10] sm:$0xff] }
  0x28   :  { %600 = vmatprep.subr.bf16.mxu0 %v599_v3  ;;  %v166_v9 = vld [vmem:[%s878_s3 + $0x8] sm:$0xff]  ;;  %v168_v12 = vld [vmem:[%s878_s3 + $0x18] sm:$0xff]  ;;  %v169_v14 = vld [vmem:[%s878_s3 + $0x20] sm:$0xff] }
  0x29   :  { %602 = vmatpush3.bf16.msra.mxu0 %v599_v3  ;;  %v607_v10 = vpack.c.bf16 %v166_v9, %v165_v8  ;;  %v611_v13 = vpack.c.bf16 %v168_v12, %v167_v11  ;;  %v170_v15 = vld [vmem:[%s878_s3 + $0x28] sm:$0xff]  ;;  %v171_v17 = vld [vmem:[%s878_s3 + $0x30] sm:$0xff]  ;;  %v172_v18 = vld [vmem:[%s878_s3 + $0x38] sm:$0xff] }
  0x2a   :  { %604 = vmatprep.subr.bf16.mxu0 %v603_v6  ;;  %v615_v16 = vpack.c.bf16 %v170_v15, %v169_v14  ;;  %v619_v19 = vpack.c.bf16 %v172_v18, %v171_v17  ;;  %v483_v20 = vld [vmem:[%s877_s2] ss:$0 sm:$0xff]  ;;  %v273_v36 = vld [vmem:[#allocation4 + $0x8] sm:$0xff]  ;;  %v274_v38 = vld [vmem:[#allocation4 + $0x10] sm:$0xff] }
  0x2b   :  { %608 = vmatprep.subr.bf16.mxu1 %v607_v10  ;;  %v272_v35 = vld [vmem:[#allocation4] sm:$0xff]  ;;  %v275_v39 = vld [vmem:[#allocation4 + $0x18] sm:$0xff]  ;;  %v277_v42 = vld [vmem:[#allocation4 + $0x28] sm:$0xff] }
  0x2c   :  { %610 = vmatpush3.bf16.msra.mxu1 %v607_v10  ;;  %v623_v37 = vpack.c.bf16 %v273_v36, %v272_v35  ;;  %v627_v40 = vpack.c.bf16 %v275_v39, %v274_v38  ;;  %v276_v41 = vld [vmem:[#allocation4 + $0x20] sm:$0xff]  ;;  %v278_v44 = vld [vmem:[#allocation4 + $0x30] sm:$0xff]  ;;  %v279_v45 = vld [vmem:[#allocation4 + $0x38] sm:$0xff] }
  0x2d   :  { %606 = vmatpush3.bf16.msra.mxu0 %v603_v6  ;;  %612 = vmatprep.subr.bf16.mxu1 %v611_v13  ;;  %v631_v43 = vpack.c.bf16 %v277_v42, %v276_v41  ;;  %v635_v46 = vpack.c.bf16 %v279_v45, %v278_v44  ;;  %v486_v47 = vld [vmem:[%s879_s4] ss:$0 sm:$0xff]  ;;  %v379_v63 = vld [vmem:[%s882_s7 + $0x8] sm:$0xff]  ;;  %v380_v1 = vld [vmem:[%s882_s7 + $0x10] sm:$0xff] }
  0x2e   :  { %624 = vmatprep.subr.bf16.mxu0 %v623_v37  ;;  %v378_v62 = vld [vmem:[%s882_s7] sm:$0xff]  ;;  %v381_v2 = vld [vmem:[%s882_s7 + $0x18] sm:$0xff]  ;;  %v383_v5 = vld [vmem:[%s882_s7 + $0x28] sm:$0xff] }
  0x2f   :  { %v639_v0 = vpack.c.bf16 %v379_v63, %v378_v62  ;;  %v643_v3 = vpack.c.bf16 %v381_v2, %v380_v1  ;;  %v382_v4 = vld [vmem:[%s882_s7 + $0x20] sm:$0xff]  ;;  %v385_v8 = vld [vmem:[%s882_s7 + $0x38] sm:$0xff] }
  0x30   :  { %540 = vmatmul.mubr.msk.f32.vlgmr.msra.gmra.mrb[0].mxu0 %vm73_vm0, %v61_v7  ;;  %614 = vmatpush3.bf16.msra.mxu1 %v611_v13  ;;  %v647_v6 = vpack.c.bf16 %v383_v5, %v382_v4  ;;  %v384_v7 = vld [vmem:[%s882_s7 + $0x30] sm:$0xff]  ;;  %v489_v10 = vld [vmem:[%s881_s6] ss:$0 sm:$0xff] }
  0x31   :  { %616 = vmatprep.subr.bf16.mxu1 %v615_v16  ;;  %626 = vmatpush3.bf16.msra.mxu0 %v623_v37  ;;  %v651_v9 = vpack.c.bf16 %v385_v8, %v384_v7 }
  0x32   :  { %628 = vmatprep.subr.bf16.mxu0 %v627_v40 }
  0x34   :  { %618 = vmatpush3.bf16.msra.mxu1 %v615_v16 }
  0x35   :  { %620 = vmatprep.subr.bf16.mxu1 %v619_v19  ;;  %630 = vmatpush3.bf16.msra.mxu0 %v627_v40 }
  0x36   :  { %632 = vmatprep.subr.bf16.mxu0 %v631_v43 }
  0x38   :  { %622 = vmatpush3.bf16.msra.mxu1 %v619_v19 }
  0x39   :  { %634 = vmatpush3.bf16.msra.mxu0 %v631_v43  ;;  %640 = vmatprep.subr.bf16.mxu1 %v639_v0 }
  0x3a   :  { %636 = vmatprep.subr.bf16.mxu0 %v635_v46 }
  0x3d   :  { %638 = vmatpush3.bf16.msra.mxu0 %v635_v46 }
 0x103   :  { %v541_v21 = vpop.f32.mrb[0].mxu0 }
 0x104   :  { %v152_v22 = vadd.f32 %v541_v21, %v483_v20  ;;  %v146_v23 = vpop.f32.mrb[1].mxu0 }
 0x105   :  { %v147_v24 = vadd.f32 %v483_v20, %v146_v23 }
 0x106   :  { %v158_v25 = vmul.f32 0.70710677, %v152_v22  ;;  %v156_v32 = vmul.f32 0.5, %v152_v22 }
 0x107   :  { %v157_v26 = vmul.f32 0.70710677, %v147_v24  ;;  %v155_v30 = vmul.f32 0.5, %v147_v24 }
 0x108   :  { %659 = verf.f32 %v158_v25  ;;  %v492_v25 = vld [vmem:[%s883_s8] ss:$0 sm:$0xff] }
 0x109   :  { %661 = verf.f32 %v157_v26 }
 0x112   :  { %v660_v27 = vpop.eup %659 }
 0x113   :  { %v662_v28 = vpop.eup %661  ;;  %v162_v29 = vadd.f32 1.0, %v660_v27 }
 0x114   :  { %v161_v31 = vadd.f32 1.0, %v662_v28 }
 0x115   :  { %v164_v34 = vmul.f32 %v162_v29, %v156_v32 }
 0x116   :  { %v163_v33 = vmul.f32 %v161_v31, %v155_v30 }
 0x118   :  { %558 = vmatprep.mubr.msk.f32.mxu1 %vm180_vm1, %v163_v33 }
 0x119   :  { %559 = vmatmul.mubr.msk.f32.vlgmr.msra.gmra.mrb[0].mxu1 %vm180_vm1, %v164_v34 }
 0x11a   :  { %642 = vmatpush3.bf16.msra.mxu1 %v639_v0 }
 0x11b   :  { %644 = vmatprep.subr.bf16.mxu1 %v643_v3 }
 0x11e   :  { %646 = vmatpush3.bf16.msra.mxu1 %v643_v3 }
 0x11f   :  { %648 = vmatprep.subr.bf16.mxu1 %v647_v6 }
 0x122   :  { %650 = vmatpush3.bf16.msra.mxu1 %v647_v6 }
 0x123   :  { %652 = vmatprep.subr.bf16.mxu1 %v651_v9 }
 0x126   :  { %654 = vmatpush3.bf16.msra.mxu1 %v651_v9 }
 0x1ec   :  { %v560_v48 = vpop.f32.mrb[0].mxu1 }
 0x1ed   :  { %v259_v49 = vadd.f32 %v560_v48, %v486_v47  ;;  %v253_v50 = vpop.f32.mrb[1].mxu1 }
 0x1ee   :  { %v254_v51 = vadd.f32 %v486_v47, %v253_v50 }
 0x1ef   :  { %v265_v52 = vmul.f32 0.70710677, %v259_v49  ;;  %v263_v59 = vmul.f32 0.5, %v259_v49 }
 0x1f0   :  { %v264_v53 = vmul.f32 0.70710677, %v254_v51  ;;  %v262_v57 = vmul.f32 0.5, %v254_v51 }
 0x1f1   :  { %663 = verf.f32 %v265_v52 }
 0x1f2   :  { %665 = verf.f32 %v264_v53 }
 0x1fb   :  { %v664_v54 = vpop.eup %663 }
 0x1fc   :  { %v666_v55 = vpop.eup %665  ;;  %v269_v56 = vadd.f32 1.0, %v664_v54 }
 0x1fd   :  { %v268_v58 = vadd.f32 1.0, %v666_v55 }
 0x1fe   :  { %v271_v61 = vmul.f32 %v269_v56, %v263_v59 }
 0x1ff   :  { %v270_v60 = vmul.f32 %v268_v58, %v262_v57 }
 0x201   :  { %577 = vmatprep.mubr.msk.f32.mxu0 %vm180_vm1, %v270_v60 }
 0x202   :  { %578 = vmatmul.mubr.msk.f32.vlgmr.msra.gmra.mrb[2].mxu0 %vm180_vm1, %v271_v61 }
 0x2d5   :  { %v579_v11 = vpop.f32.mrb[2].mxu0 }
 0x2d6   :  { %v365_v12 = vadd.f32 %v579_v11, %v489_v10  ;;  %v359_v13 = vpop.f32.mrb[3].mxu0 }
 0x2d7   :  { %v360_v14 = vadd.f32 %v489_v10, %v359_v13 }
 0x2d8   :  { %v371_v15 = vmul.f32 0.70710677, %v365_v12  ;;  %v369_v22 = vmul.f32 0.5, %v365_v12 }
 0x2d9   :  { %v370_v16 = vmul.f32 0.70710677, %v360_v14  ;;  %v368_v20 = vmul.f32 0.5, %v360_v14 }
 0x2da   :  { %667 = verf.f32 %v371_v15 }
 0x2db   :  { %669 = verf.f32 %v370_v16 }
 0x2e4   :  { %v668_v17 = vpop.eup %667 }
 0x2e5   :  { %v670_v18 = vpop.eup %669  ;;  %v375_v19 = vadd.f32 1.0, %v668_v17 }
 0x2e6   :  { %v374_v21 = vadd.f32 1.0, %v670_v18 }
 0x2e7   :  { %v377_v24 = vmul.f32 %v375_v19, %v369_v22 }
 0x2e8   :  { %v376_v23 = vmul.f32 %v374_v21, %v368_v20 }
 0x2ea   :  { %596 = vmatprep.mubr.msk.f32.mxu1 %vm180_vm1, %v376_v23 }
 0x2eb   :  { %597 = vmatmul.mubr.msk.f32.vlgmr.msra.gmra.mrb[2].mxu1 %vm180_vm1, %v377_v24 }
 0x3be   :  { %v598_v26 = vpop.f32.mrb[2].mxu1 }
 0x3bf   :  { %v471_v27 = vadd.f32 %v598_v26, %v492_v25  ;;  %v465_v28 = vpop.f32.mrb[3].mxu1 }
 0x3c0   :  { %v466_v29 = vadd.f32 %v492_v25, %v465_v28 }
 0x3c1   :  { %476 = vst.msk [vmem:[%s884_s9 + $0x8] sm:$0xff] %vm474_vm2, %v471_v27 }
 0x3c2   :  { %475 = vst.msk [vmem:[%s884_s9] sm:$0xff] %vm474_vm2, %v466_v29 }
 0x3c3   :  { %481 = vsyncpa [#allocation3], 1 }
 0x3c4   :  { %482 = vsyncpa [#allocation5], 1 }

</bundles_post_ra>
